<compile_context>
chip_gen: v7x
topology: tpu7x:2x2x1
jax: 0.10.0
libtpu: 0.0.40
codegen_flags: <defaults>
</compile_context>

<pallas_src>
import functools

import jax
import jax.numpy as jnp
from jax.experimental import pallas as pl
from jax.experimental.pallas import tpu as pltpu


def _round_up(x: int, m: int) -> int:
    return ((x + m - 1) // m) * m


def _smooth_ce_kernel(logits_ref, targets_ref, loss_ref,
                      m_ref, s_ref, sumx_ref, xt_ref,
                      *, num_classes: int, smoothing: float, block_c: int,
                      ragged_c: bool, need_sumx: bool):
    """One (batch-tile, class-tile) grid step of smoothed cross-entropy.

    logits_ref : (TB, TC) VMEM, native dtype (f32 or bf16)
    targets_ref: (TB, 1) int32 VMEM
    loss_ref   : (TB, 1) f32 VMEM  (per-row loss, written on the last C tile)
    m_ref, s_ref, sumx_ref, xt_ref : (TB, 1) f32 VMEM scratch accumulators
    """
    c_idx = pl.program_id(1)
    num_c = pl.num_programs(1)

    @pl.when(c_idx == 0)
    def _init():
        m_ref[...] = jnp.full_like(m_ref, -jnp.inf)
        s_ref[...] = jnp.zeros_like(s_ref)
        if need_sumx:
            sumx_ref[...] = jnp.zeros_like(sumx_ref)
        xt_ref[...] = jnp.zeros_like(xt_ref)

    x = logits_ref[...].astype(jnp.float32)          # (TB, TC)
    t = targets_ref[...]                             # (TB, 1) int32
    tb, tc = x.shape

    local_ids = jax.lax.broadcasted_iota(jnp.int32, (tb, tc), 1)   # lane ids
    t_local = t - c_idx * block_c                    # (TB, 1) per-row scalar

    def update(valid):
        # valid is None on the mask-free fast path, else a (TB, TC) bool mask.
        x_lse = x if valid is None else jnp.where(valid, x, -jnp.inf)
        tile_max = jnp.max(x_lse, axis=-1, keepdims=True)            # (TB, 1)
        m_old = m_ref[...]
        m_new = jnp.maximum(m_old, tile_max)
        alpha = jnp.exp(m_old - m_new)
        p_sum = jnp.sum(jnp.exp(x_lse - m_new), axis=-1, keepdims=True)
        s_ref[...] = alpha * s_ref[...] + p_sum
        m_ref[...] = m_new
        if need_sumx:
            x_sum = x if valid is None else jnp.where(valid, x, 0.0)
            sumx_ref[...] += jnp.sum(x_sum, axis=-1, keepdims=True)
        # Target logit (the target class appears in exactly one class tile).
        xt_ref[...] += jnp.sum(jnp.where(local_ids == t_local, x, 0.0),
                               axis=-1, keepdims=True)

    if ragged_c:
        # Fast (mask-free) path on interior tiles, masked path on the last.
        @pl.when(c_idx < num_c - 1)
        def _fast():
            update(None)

        @pl.when(c_idx == num_c - 1)
        def _masked():
            update(local_ids < (num_classes - c_idx * block_c))
    else:
        update(None)

    @pl.when(c_idx == num_c - 1)
    def _finalize():
        lse = m_ref[...] + jnp.log(s_ref[...])                       # (TB, 1)
        on = jnp.float32(1.0 - smoothing)
        logp_t = xt_ref[...] - lse                                   # logp[t]
        if need_sumx:
            off = (jnp.float32(smoothing / (num_classes - 1))
                   if num_classes > 1 else jnp.float32(0.0))
            sum_logp = sumx_ref[...] - jnp.float32(num_classes) * lse
            loss_ref[...] = -(off * sum_logp + (on - off) * logp_t)
        else:
            loss_ref[...] = -on * logp_t


def smooth_cross_entropy_loss(logits: jax.Array,
                              targets: jax.Array,
                              smoothing: float = 0.0,
                              *,
                              block_b: int | None = None,
                              block_c: int | None = None) -> jax.Array:
    """Pallas-backed equivalent of SmoothCrossEntropyLoss.forward."""
    if not 0 <= smoothing < 1:
        raise ValueError("Smoothing value must be in [0, 1[.")
    B, C = logits.shape
    targets = targets.astype(jnp.int32)

    # Class tile: multiple of 128 lanes, up to 4096 (4 MiB f32 per 256-row
    # tile; double-buffered input + f32 temporaries stay < ~32 MiB).
    if block_c is None:
        block_c = min(_round_up(C, 128), 4096)
    else:
        block_c = _round_up(block_c, 128)

    # Batch tile: multiple of 8 sublanes.  Default aims for >= 2 batch blocks
    # (v7x dual-TC 'parallel' sharding) while capping at 256 rows.
    if block_b is None:
        block_b = max(8, _round_up(pl.cdiv(B, 2), 8)) if B <= 512 else 256
    else:
        block_b = _round_up(block_b, 8)

    grid = (pl.cdiv(B, block_b), pl.cdiv(C, block_c))
    ragged_c = (C % block_c) != 0
    need_sumx = float(smoothing) > 0.0

    targets2d = targets.reshape(B, 1)

    per_row = pl.pallas_call(
        functools.partial(_smooth_ce_kernel,
                          num_classes=C,
                          smoothing=float(smoothing),
                          block_c=block_c,
                          ragged_c=ragged_c,
                          need_sumx=need_sumx),
        out_shape=jax.ShapeDtypeStruct((B, 1), jnp.float32),
        grid_spec=pltpu.PrefetchScalarGridSpec(
            num_scalar_prefetch=0,
            grid=grid,
            in_specs=[
                # Logits streamed per (batch, class) tile in native dtype.
                pl.BlockSpec((block_b, block_c), lambda b, c: (b, c)),
                # Targets: one (TB, 1) int32 block per batch tile.
                pl.BlockSpec((block_b, 1), lambda b, c: (b, 0)),
            ],
            # Per-row losses; same block across the class (reduction) axis.
            out_specs=pl.BlockSpec((block_b, 1), lambda b, c: (b, 0)),
            scratch_shapes=[pltpu.VMEM((block_b, 1), jnp.float32)] * 4,
        ),
        compiler_params=pltpu.CompilerParams(
            dimension_semantics=("parallel", "arbitrary"),
            vmem_limit_bytes=48 * 1024 * 1024,
        ),
    )(logits, targets2d)

    # Final mean over the real rows in plain JAX (output has exactly B rows;
    # OOB rows of a ragged last batch block are never written/read).
    return jnp.mean(per_row[:, 0])


def _reference(logits, targets, smoothing):
    """Pure-JAX reference matching the PyTorch module."""
    B, C = logits.shape
    onehot = jax.nn.one_hot(targets, C, dtype=jnp.float32)
    off = smoothing / (C - 1) if C > 1 else 0.0
    smoothed = onehot * (1.0 - smoothing) + (1.0 - onehot) * off
    logp = jax.nn.log_softmax(logits.astype(jnp.float32), axis=-1)
    return jnp.mean(jnp.sum(-smoothed * logp, axis=-1))


if __name__ == "__main__":
    key = jax.random.PRNGKey(0)
    k1, k2, k3, k4, k5, k6 = jax.random.split(key, 6)

    # Case 1: tiny (batch, nb_classes), single (masked) tile.
    B, C, smoothing = 8, 16, 0.1
    logits = jax.random.normal(k1, (B, C), dtype=jnp.float32)
    targets = jax.random.randint(k2, (B,), 0, C, dtype=jnp.int32)
    loss = jax.block_until_ready(smooth_cross_entropy_loss(logits, targets, smoothing))
    ref = _reference(logits, targets, smoothing)
    assert jnp.allclose(loss, ref, atol=1e-5, rtol=1e-5), (loss, ref)

    # Case 2: ragged class dim (C=300, tc=128 -> 3 tiles, masked last tile),
    # exercises interior fast path + online-LSE rescaling; no HBM padding.
    B2, C2, smoothing2 = 16, 300, 0.05
    logits2 = jax.random.normal(k3, (B2, C2), dtype=jnp.float32) * 4.0
    targets2 = jax.random.randint(k4, (B2,), 0, C2, dtype=jnp.int32)
    loss2 = jax.block_until_ready(
        smooth_cross_entropy_loss(logits2, targets2, smoothing2, block_c=128))
    ref2 = _reference(logits2, targets2, smoothing2)
    assert jnp.allclose(loss2, ref2, atol=1e-4, rtol=1e-4), (loss2, ref2)

    # Case 3: bf16 logits stream (upcast happens per-tile inside the kernel).
    logits_bf16 = logits2.astype(jnp.bfloat16)
    loss3 = jax.block_until_ready(
        smooth_cross_entropy_loss(logits_bf16, targets2, smoothing2, block_c=128))
    ref3 = _reference(logits_bf16.astype(jnp.float32), targets2, smoothing2)
    assert jnp.allclose(loss3, ref3, atol=2e-3, rtol=2e-3), (loss3, ref3)

    # Case 4: smoothing == 0 specialization + exactly divisible class dim
    # (mask-free fast path on every tile) + ragged batch dim (B=10).
    B4, C4 = 10, 256
    logits4 = jax.random.normal(k5, (B4, C4), dtype=jnp.float32) * 2.0
    targets4 = jax.random.randint(k6, (B4,), 0, C4, dtype=jnp.int32)
    loss4 = jax.block_until_ready(
        smooth_cross_entropy_loss(logits4, targets4, 0.0, block_c=128))
    ref4 = _reference(logits4, targets4, 0.0)
    assert jnp.allclose(loss4, ref4, atol=1e-5, rtol=1e-5), (loss4, ref4)

    print("KERNEL_OK")
</pallas_src>

<mosaic_0001>
module attributes {stable_mosaic.version = 11 : i64} {
  func.func @_smooth_ce_kernel(%arg0: i32, %arg1: i32, %arg2: memref<8x128xf32, #tpu.memory_space<vmem>>, %arg3: memref<8x1xi32, #tpu.memory_space<vmem>>, %arg4: memref<8x1xf32, #tpu.memory_space<vmem>>, %arg5: memref<8x1xf32, #tpu.memory_space<vmem>>, %arg6: memref<8x1xf32, #tpu.memory_space<vmem>>, %arg7: memref<8x1xf32, #tpu.memory_space<vmem>>, %arg8: memref<8x1xf32, #tpu.memory_space<vmem>>) attributes {dimension_semantics = [#tpu.dimension_semantics<parallel>, #tpu.dimension_semantics<arbitrary>], iteration_bounds = array<i64: 1, 1>, scalar_prefetch = 0 : i64, scratch_operands = 4 : i64, tpu.core_type = #tpu.core_type<tc>, window_params = [{transform_indices = @transform_0, window_bounds = array<i64: 8, 128>}, {transform_indices = @transform_1, window_bounds = array<i64: 8, 1>}, {transform_indices = @transform_2, window_bounds = array<i64: 8, 1>}]} {
    %c0_i32 = arith.constant 0 : i32
    %0 = arith.cmpi eq, %arg1, %c0_i32 : i32
    %1 = arith.extui %0 : i1 to i32
    %c0_i32_0 = arith.constant 0 : i32
    %2 = arith.cmpi ne, %1, %c0_i32_0 : i32
    scf.if %2 {
      %cst = arith.constant 0xFF800000 : f32
      %18 = vector.broadcast %cst : f32 to vector<8x1xf32>
      %c0_10 = arith.constant 0 : index
      %c0_11 = arith.constant 0 : index
      %19 = vector.load %arg5[%c0_10, %c0_11] : memref<8x1xf32, #tpu.memory_space<vmem>>, vector<8x1xf32>
      tpu.vector_store %arg5[%c0_10, %c0_11], %18 {strides = array<i32>} : memref<8x1xf32, #tpu.memory_space<vmem>>, vector<8x1xf32>,
      %cst_12 = arith.constant 0.000000e+00 : f32
      %20 = vector.broadcast %cst_12 : f32 to vector<8x1xf32>
      %c0_13 = arith.constant 0 : index
      %c0_14 = arith.constant 0 : index
      %21 = vector.load %arg6[%c0_13, %c0_14] : memref<8x1xf32, #tpu.memory_space<vmem>>, vector<8x1xf32>
      tpu.vector_store %arg6[%c0_13, %c0_14], %20 {strides = array<i32>} : memref<8x1xf32, #tpu.memory_space<vmem>>, vector<8x1xf32>,
      %cst_15 = arith.constant 0.000000e+00 : f32
      %22 = vector.broadcast %cst_15 : f32 to vector<8x1xf32>
      %c0_16 = arith.constant 0 : index
      %c0_17 = arith.constant 0 : index
      %23 = vector.load %arg7[%c0_16, %c0_17] : memref<8x1xf32, #tpu.memory_space<vmem>>, vector<8x1xf32>
      tpu.vector_store %arg7[%c0_16, %c0_17], %22 {strides = array<i32>} : memref<8x1xf32, #tpu.memory_space<vmem>>, vector<8x1xf32>,
      %cst_18 = arith.constant 0.000000e+00 : f32
      %24 = vector.broadcast %cst_18 : f32 to vector<8x1xf32>
      %c0_19 = arith.constant 0 : index
      %c0_20 = arith.constant 0 : index
      %25 = vector.load %arg8[%c0_19, %c0_20] : memref<8x1xf32, #tpu.memory_space<vmem>>, vector<8x1xf32>
      tpu.vector_store %arg8[%c0_19, %c0_20], %24 {strides = array<i32>} : memref<8x1xf32, #tpu.memory_space<vmem>>, vector<8x1xf32>,
    } else {
    }
    %c0 = arith.constant 0 : index
    %c0_1 = arith.constant 0 : index
    %3 = vector.load %arg2[%c0, %c0_1] : memref<8x128xf32, #tpu.memory_space<vmem>>, vector<8x128xf32>
    %c0_2 = arith.constant 0 : index
    %c0_3 = arith.constant 0 : index
    %4 = vector.load %arg3[%c0_2, %c0_3] : memref<8x1xi32, #tpu.memory_space<vmem>>, vector<8x1xi32>
    %5 = tpu.iota {dimensions = array<i32: 1>} : vector<8x128xi32>
    %c128_i32 = arith.constant 128 : i32
    %6 = arith.muli %arg1, %c128_i32 : i32
    %7 = vector.broadcast %6 : i32 to vector<8x1xi32>
    %8 = arith.subi %4, %7 : vector<8x1xi32>
    %c0_i32_4 = arith.constant 0 : i32
    %9 = arith.cmpi slt, %arg1, %c0_i32_4 : i32
    %10 = arith.extui %9 : i1 to i32
    %c0_i32_5 = arith.constant 0 : i32
    %11 = arith.cmpi ne, %10, %c0_i32_5 : i32
    scf.if %11 {
      %cst = arith.constant dense<0xFF800000> : vector<8xf32>
      %18 = vector.multi_reduction <maximumf>, %3, %cst [1] : vector<8x128xf32> to vector<8xf32>
      %19 = vector.shape_cast %18 : vector<8xf32> to vector<8x1xf32>
      %c0_10 = arith.constant 0 : index
      %c0_11 = arith.constant 0 : index
      %20 = vector.load %arg5[%c0_10, %c0_11] : memref<8x1xf32, #tpu.memory_space<vmem>>, vector<8x1xf32>
      %21 = arith.maximumf %20, %19 : vector<8x1xf32>
      %22 = arith.subf %20, %21 : vector<8x1xf32>
      %23 = math.exp %22 : vector<8x1xf32>
      %24 = vector.broadcast %21 : vector<8x1xf32> to vector<8x128xf32>
      %25 = arith.subf %3, %24 : vector<8x128xf32>
      %26 = math.exp %25 : vector<8x128xf32>
      %cst_12 = arith.constant dense<0.000000e+00> : vector<8xf32>
      %27 = vector.multi_reduction <add>, %26, %cst_12 [1] : vector<8x128xf32> to vector<8xf32>
      %28 = vector.shape_cast %27 : vector<8xf32> to vector<8x1xf32>
      %c0_13 = arith.constant 0 : index
      %c0_14 = arith.constant 0 : index
      %29 = vector.load %arg6[%c0_13, %c0_14] : memref<8x1xf32, #tpu.memory_space<vmem>>, vector<8x1xf32>
      %30 = arith.mulf %23, %29 : vector<8x1xf32>
      %31 = arith.addf %30, %28 : vector<8x1xf32>
      %c0_15 = arith.constant 0 : index
      %c0_16 = arith.constant 0 : index
      %32 = vector.load %arg6[%c0_15, %c0_16] : memref<8x1xf32, #tpu.memory_space<vmem>>, vector<8x1xf32>
      tpu.vector_store %arg6[%c0_15, %c0_16], %31 {strides = array<i32>} : memref<8x1xf32, #tpu.memory_space<vmem>>, vector<8x1xf32>,
      %c0_17 = arith.constant 0 : index
      %c0_18 = arith.constant 0 : index
      %33 = vector.load %arg5[%c0_17, %c0_18] : memref<8x1xf32, #tpu.memory_space<vmem>>, vector<8x1xf32>
      tpu.vector_store %arg5[%c0_17, %c0_18], %21 {strides = array<i32>} : memref<8x1xf32, #tpu.memory_space<vmem>>, vector<8x1xf32>,
      %c0_19 = arith.constant 0 : index
      %c0_20 = arith.constant 0 : index
      %34 = vector.load %arg7[%c0_19, %c0_20] : memref<8x1xf32, #tpu.memory_space<vmem>>, vector<8x1xf32>
      %cst_21 = arith.constant dense<0.000000e+00> : vector<8xf32>
      %35 = vector.multi_reduction <add>, %3, %cst_21 [1] : vector<8x128xf32> to vector<8xf32>
      %36 = vector.shape_cast %35 : vector<8xf32> to vector<8x1xf32>
      %37 = arith.addf %34, %36 : vector<8x1xf32>
      %c0_22 = arith.constant 0 : index
      %c0_23 = arith.constant 0 : index
      %38 = vector.load %arg7[%c0_22, %c0_23] : memref<8x1xf32, #tpu.memory_space<vmem>>, vector<8x1xf32>
      tpu.vector_store %arg7[%c0_22, %c0_23], %37 {strides = array<i32>} : memref<8x1xf32, #tpu.memory_space<vmem>>, vector<8x1xf32>,
      %c0_24 = arith.constant 0 : index
      %c0_25 = arith.constant 0 : index
      %39 = vector.load %arg8[%c0_24, %c0_25] : memref<8x1xf32, #tpu.memory_space<vmem>>, vector<8x1xf32>
      %40 = vector.broadcast %8 : vector<8x1xi32> to vector<8x128xi32>
      %41 = arith.cmpi eq, %5, %40 : vector<8x128xi32>
      %cst_26 = arith.constant 0.000000e+00 : f32
      %42 = vector.broadcast %cst_26 : f32 to vector<8x128xf32>
      %43 = arith.select %41, %3, %42 : vector<8x128xi1>, vector<8x128xf32>
      %cst_27 = arith.constant dense<0.000000e+00> : vector<8xf32>
      %44 = vector.multi_reduction <add>, %43, %cst_27 [1] : vector<8x128xf32> to vector<8xf32>
      %45 = vector.shape_cast %44 : vector<8xf32> to vector<8x1xf32>
      %46 = arith.addf %39, %45 : vector<8x1xf32>
      %c0_28 = arith.constant 0 : index
      %c0_29 = arith.constant 0 : index
      %47 = vector.load %arg8[%c0_28, %c0_29] : memref<8x1xf32, #tpu.memory_space<vmem>>, vector<8x1xf32>
      tpu.vector_store %arg8[%c0_28, %c0_29], %46 {strides = array<i32>} : memref<8x1xf32, #tpu.memory_space<vmem>>, vector<8x1xf32>,
    } else {
    }
    %c0_i32_6 = arith.constant 0 : i32
    %12 = arith.cmpi eq, %arg1, %c0_i32_6 : i32
    %13 = arith.extui %12 : i1 to i32
    %c0_i32_7 = arith.constant 0 : i32
    %14 = arith.cmpi ne, %13, %c0_i32_7 : i32
    scf.if %14 {
      %c128_i32_10 = arith.constant 128 : i32
      %18 = arith.muli %arg1, %c128_i32_10 : i32
      %c16_i32 = arith.constant 16 : i32
      %19 = arith.subi %c16_i32, %18 : i32
      %20 = vector.broadcast %19 : i32 to vector<8x128xi32>
      %21 = arith.cmpi slt, %5, %20 : vector<8x128xi32>
      %cst = arith.constant 0xFF800000 : f32
      %22 = vector.broadcast %cst : f32 to vector<8x128xf32>
      %23 = arith.select %21, %3, %22 : vector<8x128xi1>, vector<8x128xf32>
      %cst_11 = arith.constant dense<0xFF800000> : vector<8xf32>
      %24 = vector.multi_reduction <maximumf>, %23, %cst_11 [1] : vector<8x128xf32> to vector<8xf32>
      %25 = vector.shape_cast %24 : vector<8xf32> to vector<8x1xf32>
      %c0_12 = arith.constant 0 : index
      %c0_13 = arith.constant 0 : index
      %26 = vector.load %arg5[%c0_12, %c0_13] : memref<8x1xf32, #tpu.memory_space<vmem>>, vector<8x1xf32>
      %27 = arith.maximumf %26, %25 : vector<8x1xf32>
      %28 = arith.subf %26, %27 : vector<8x1xf32>
      %29 = math.exp %28 : vector<8x1xf32>
      %30 = vector.broadcast %27 : vector<8x1xf32> to vector<8x128xf32>
      %31 = arith.subf %23, %30 : vector<8x128xf32>
      %32 = math.exp %31 : vector<8x128xf32>
      %cst_14 = arith.constant dense<0.000000e+00> : vector<8xf32>
      %33 = vector.multi_reduction <add>, %32, %cst_14 [1] : vector<8x128xf32> to vector<8xf32>
      %34 = vector.shape_cast %33 : vector<8xf32> to vector<8x1xf32>
      %c0_15 = arith.constant 0 : index
      %c0_16 = arith.constant 0 : index
      %35 = vector.load %arg6[%c0_15, %c0_16] : memref<8x1xf32, #tpu.memory_space<vmem>>, vector<8x1xf32>
      %36 = arith.mulf %29, %35 : vector<8x1xf32>
      %37 = arith.addf %36, %34 : vector<8x1xf32>
      %c0_17 = arith.constant 0 : index
      %c0_18 = arith.constant 0 : index
      %38 = vector.load %arg6[%c0_17, %c0_18] : memref<8x1xf32, #tpu.memory_space<vmem>>, vector<8x1xf32>
      tpu.vector_store %arg6[%c0_17, %c0_18], %37 {strides = array<i32>} : memref<8x1xf32, #tpu.memory_space<vmem>>, vector<8x1xf32>,
      %c0_19 = arith.constant 0 : index
      %c0_20 = arith.constant 0 : index
      %39 = vector.load %arg5[%c0_19, %c0_20] : memref<8x1xf32, #tpu.memory_space<vmem>>, vector<8x1xf32>
      tpu.vector_store %arg5[%c0_19, %c0_20], %27 {strides = array<i32>} : memref<8x1xf32, #tpu.memory_space<vmem>>, vector<8x1xf32>,
      %cst_21 = arith.constant 0.000000e+00 : f32
      %40 = vector.broadcast %cst_21 : f32 to vector<8x128xf32>
      %41 = arith.select %21, %3, %40 : vector<8x128xi1>, vector<8x128xf32>
      %c0_22 = arith.constant 0 : index
      %c0_23 = arith.constant 0 : index
      %42 = vector.load %arg7[%c0_22, %c0_23] : memref<8x1xf32, #tpu.memory_space<vmem>>, vector<8x1xf32>
      %cst_24 = arith.constant dense<0.000000e+00> : vector<8xf32>
      %43 = vector.multi_reduction <add>, %41, %cst_24 [1] : vector<8x128xf32> to vector<8xf32>
      %44 = vector.shape_cast %43 : vector<8xf32> to vector<8x1xf32>
      %45 = arith.addf %42, %44 : vector<8x1xf32>
      %c0_25 = arith.constant 0 : index
      %c0_26 = arith.constant 0 : index
      %46 = vector.load %arg7[%c0_25, %c0_26] : memref<8x1xf32, #tpu.memory_space<vmem>>, vector<8x1xf32>
      tpu.vector_store %arg7[%c0_25, %c0_26], %45 {strides = array<i32>} : memref<8x1xf32, #tpu.memory_space<vmem>>, vector<8x1xf32>,
      %c0_27 = arith.constant 0 : index
      %c0_28 = arith.constant 0 : index
      %47 = vector.load %arg8[%c0_27, %c0_28] : memref<8x1xf32, #tpu.memory_space<vmem>>, vector<8x1xf32>
      %48 = vector.broadcast %8 : vector<8x1xi32> to vector<8x128xi32>
      %49 = arith.cmpi eq, %5, %48 : vector<8x128xi32>
      %cst_29 = arith.constant 0.000000e+00 : f32
      %50 = vector.broadcast %cst_29 : f32 to vector<8x128xf32>
      %51 = arith.select %49, %3, %50 : vector<8x128xi1>, vector<8x128xf32>
      %cst_30 = arith.constant dense<0.000000e+00> : vector<8xf32>
      %52 = vector.multi_reduction <add>, %51, %cst_30 [1] : vector<8x128xf32> to vector<8xf32>
      %53 = vector.shape_cast %52 : vector<8xf32> to vector<8x1xf32>
      %54 = arith.addf %47, %53 : vector<8x1xf32>
      %c0_31 = arith.constant 0 : index
      %c0_32 = arith.constant 0 : index
      %55 = vector.load %arg8[%c0_31, %c0_32] : memref<8x1xf32, #tpu.memory_space<vmem>>, vector<8x1xf32>
      tpu.vector_store %arg8[%c0_31, %c0_32], %54 {strides = array<i32>} : memref<8x1xf32, #tpu.memory_space<vmem>>, vector<8x1xf32>,
    } else {
    }
    %c0_i32_8 = arith.constant 0 : i32
    %15 = arith.cmpi eq, %arg1, %c0_i32_8 : i32
    %16 = arith.extui %15 : i1 to i32
    %c0_i32_9 = arith.constant 0 : i32
    %17 = arith.cmpi ne, %16, %c0_i32_9 : i32
    scf.if %17 {
      %c0_10 = arith.constant 0 : index
      %c0_11 = arith.constant 0 : index
      %18 = vector.load %arg5[%c0_10, %c0_11] : memref<8x1xf32, #tpu.memory_space<vmem>>, vector<8x1xf32>
      %c0_12 = arith.constant 0 : index
      %c0_13 = arith.constant 0 : index
      %19 = vector.load %arg6[%c0_12, %c0_13] : memref<8x1xf32, #tpu.memory_space<vmem>>, vector<8x1xf32>
      %20 = math.log %19 : vector<8x1xf32>
      %21 = arith.addf %18, %20 : vector<8x1xf32>
      %c0_14 = arith.constant 0 : index
      %c0_15 = arith.constant 0 : index
      %22 = vector.load %arg8[%c0_14, %c0_15] : memref<8x1xf32, #tpu.memory_space<vmem>>, vector<8x1xf32>
      %23 = arith.subf %22, %21 : vector<8x1xf32>
      %c0_16 = arith.constant 0 : index
      %c0_17 = arith.constant 0 : index
      %24 = vector.load %arg7[%c0_16, %c0_17] : memref<8x1xf32, #tpu.memory_space<vmem>>, vector<8x1xf32>
      %cst = arith.constant 1.600000e+01 : f32
      %25 = vector.broadcast %cst : f32 to vector<8x1xf32>
      %26 = arith.mulf %25, %21 : vector<8x1xf32>
      %27 = arith.subf %24, %26 : vector<8x1xf32>
      %cst_18 = arith.constant 0.00666666683 : f32
      %28 = vector.broadcast %cst_18 : f32 to vector<8x1xf32>
      %29 = arith.mulf %28, %27 : vector<8x1xf32>
      %cst_19 = arith.constant 0.899999976 : f32
      %cst_20 = arith.constant 0.00666666683 : f32
      %30 = arith.subf %cst_19, %cst_20 : f32
      %31 = vector.broadcast %30 : f32 to vector<8x1xf32>
      %32 = arith.mulf %31, %23 : vector<8x1xf32>
      %33 = arith.addf %29, %32 : vector<8x1xf32>
      %cst_21 = arith.constant 0.000000e+00 : f32
      %34 = vector.broadcast %cst_21 : f32 to vector<8x1xf32>
      %35 = arith.subf %34, %33 : vector<8x1xf32>
      %c0_22 = arith.constant 0 : index
      %c0_23 = arith.constant 0 : index
      %36 = vector.load %arg4[%c0_22, %c0_23] : memref<8x1xf32, #tpu.memory_space<vmem>>, vector<8x1xf32>
      tpu.vector_store %arg4[%c0_22, %c0_23], %35 {strides = array<i32>} : memref<8x1xf32, #tpu.memory_space<vmem>>, vector<8x1xf32>,
    } else {
    }
    return
  }
  func.func @transform_0(%arg0: i32, %arg1: i32) -> (i32, i32) {
    %c0_i32 = arith.constant 0 : i32
    return %arg0, %arg1 : i32, i32
  }
  func.func @transform_1(%arg0: i32, %arg1: i32) -> (i32, i32) {
    %c0_i32 = arith.constant 0 : i32
    %c0_i32_0 = arith.constant 0 : i32
    return %arg0, %c0_i32 : i32, i32
  }
  func.func @transform_2(%arg0: i32, %arg1: i32) -> (i32, i32) {
    %c0_i32 = arith.constant 0 : i32
    %c0_i32_0 = arith.constant 0 : i32
    return %arg0, %c0_i32 : i32, i32
  }
}

</mosaic_0001>

<bundles_post_ra>
// kernel: tpu_custom_call.1
= control target key start
LH: loop header
LB: loop body
LE: loop exit
PB: predicated region body
PF: predicated region fallthrough
CT: control target
= control target key end

     0   :  { %v22_v0 = vlaneseq  ;;  %vm15_vm0 = vcmask 7168   ;;  %v145_v1 = vmov -inf   ;;  %v146_v5 = vmov 0   ;;  %s183_s0 = inlined_call_operand.vmem [shape: f32[8,16], index: 0, kind: input, shape index: {}]   ;;  %s184_s1 = inlined_call_operand.vmem [shape: s32[8,1], index: 1, kind: input, shape index: {}]   ;;  %s185_s2 = inlined_call_operand.vmem [shape: f32[8,1], index: 2, kind: output, shape index: {}]  }
   0x1   :  { %16 = vst.msk [vmem:[#allocation2] sm:$0xff] %vm15_vm0, %v145_v1  ;;  %v20_v2 = vld [vmem:[%s183_s0] sm:$0xff]  ;;  %137 = vset.pattern.permute.xlu0 %v146_v5  ;;  %138 = vset.pattern.permute.xlu1 %v146_v5  ;;  %v147_v6 = vmov 0.0  }
   0x2   :  { %v23_v3 = vand.u32 127, %v22_v0  ;;  %17 = vst.msk [vmem:[#allocation3] sm:$0xff] %vm15_vm0, %v147_v6  ;;  %18 = vst.msk [vmem:[#allocation4] sm:$0xff] %vm15_vm0, %v147_v6  ;;  %v21_v7 = vld [vmem:[%s184_s1] sm:$0xff] }
   0x3   :  { %19 = vst.msk [vmem:[#allocation5] sm:$0xff] %vm15_vm0, %v147_v6  ;;  %107 = vperm.xlu1 %138, %v21_v7  }
   0x4   :  { %vm74_vm1 = vcmp.lt.s32.totalorder %v23_v3, 16 }
   0x5   :  { %v75_v4 = vsel %vm74_vm1, %v20_v2, -inf  ;;  %v99_v17 = vsel %vm74_vm1, %v20_v2, 0.0 }
   0x6   :  { %76 = vmax.xlane.f32.xlu0 %v75_v4 }
   0x8   :  { %v78_v8 = vld [vmem:[#allocation2] sm:$0xff] }
   0x9   :  { %v93_v21 = vld [vmem:[#allocation3] sm:$0xff]  ;;  %v100_v25 = vld [vmem:[#allocation4] sm:$0xff] }
   0xa   :  { %v105_v28 = vld [vmem:[#allocation5] sm:$0xff] }
  0x82   :  { %v108_v16 = vpop.permute.xlu1 %107 }
  0x83   :  { %vm109_vm2 = vcmp.eq.s32.totalorder %v23_v3, %v108_v16 }
  0x84   :  { %v110_v18 = vsel %vm109_vm2, %v20_v2, 0.0 }
  0x93   :  { %v77_v9 = vpop.xlane.xlu0 %76 }
  0x94   :  { %v79_v10 = vmax.f32 %v78_v8, %v77_v9 }
  0x96   :  { %v80_v11 = vsub.f32 %v78_v8, %v79_v10  ;;  %98 = vst.msk [vmem:[#allocation2] sm:$0xff] %vm15_vm0, %v79_v10  ;;  %85 = vperm.xlu0 %137, %v79_v10  }
  0x98   :  { %v81_v19 = vmul.f32 1.442695, %v80_v11 }
  0x9d   :  { %v115_v34 = vld [vmem:[#allocation2] sm:$0xff] }
 0x115   :  { %v86_v12 = vpop.permute.xlu0 %85 }
 0x116   :  { %v88_v13 = vsub.f32 %v75_v4, %v86_v12 }
 0x118   :  { %v89_v14 = vmul.f32 1.442695, %v88_v13 }
 0x11a   :  { %139 = vpow2.f32 %v89_v14 }
 0x11b   :  { %141 = vpow2.f32 %v81_v19 }
 0x124   :  { %v140_v15 = vpop.eup %139 }
 0x125   :  { %91 = vadd.xlane.f32.xlu1 %v140_v15  ;;  %v142_v20 = vpop.eup %141 }
 0x126   :  { %v94_v22 = vmul.f32 %v142_v20, %v93_v21 }
 0x129   :  { %101 = vadd.xlane.f32.xlu1 %v99_v17 }
 0x12d   :  { %111 = vadd.xlane.f32.xlu1 %v110_v18 }
 0x1b2   :  { %v92_v23 = vpop.xlane.xlu1 %91 }
 0x1b3   :  { %v95_v24 = vadd.f32 %v94_v22, %v92_v23 }
 0x1b5   :  { %97 = vst.msk [vmem:[#allocation3] sm:$0xff] %vm15_vm0, %v95_v24 }
 0x1b6   :  { %v102_v26 = vpop.xlane.xlu1 %101 }
 0x1b7   :  { %v103_v27 = vadd.f32 %v102_v26, %v100_v25 }
 0x1b9   :  { %104 = vst.msk [vmem:[#allocation4] sm:$0xff] %vm15_vm0, %v103_v27 }
 0x1ba   :  { %v112_v29 = vpop.xlane.xlu1 %111 }
 0x1bb   :  { %v113_v30 = vadd.f32 %v112_v29, %v105_v28 }
 0x1bc   :  { %v116_v31 = vld [vmem:[#allocation3] sm:$0xff] }
 0x1bd   :  { %143 = vlog2.f32 %v116_v31  ;;  %114 = vst.msk [vmem:[#allocation5] sm:$0xff] %vm15_vm0, %v113_v30 }
 0x1c0   :  { %v122_v39 = vld [vmem:[#allocation4] sm:$0xff] }
 0x1c4   :  { %v120_v35 = vld [vmem:[#allocation5] sm:$0xff] }
 0x1c7   :  { %v144_v32 = vpop.eup %143 }
 0x1c8   :  { %v118_v33 = vmul.f32 0.6931472, %v144_v32 }
 0x1ca   :  { %v119_v36 = vadd.f32 %v118_v33, %v115_v34 }
 0x1cc   :  { %v123_v37 = vmul.f32 16.0, %v119_v36  ;;  %v121_v38 = vsub.f32 %v120_v35, %v119_v36 }
 0x1ce   :  { %v124_v40 = vsub.f32 %v122_v39, %v123_v37  ;;  %v126_v42 = vmul.f32 0.8933333, %v121_v38 }
 0x1d0   :  { %v125_v41 = vmul.f32 0.006666667, %v124_v40 }
 0x1d2   :  { %v127_v43 = vadd.f32 %v126_v42, %v125_v41 }
 0x1d4   :  { %v128_v44 = vsub.f32 0.0, %v127_v43 }
 0x1d6   :  { %129 = vst.msk [vmem:[%s185_s2] sm:$0xff] %vm15_vm0, %v128_v44 }

</bundles_post_ra>
